<compile_context>
chip_gen: v6e
topology: v6e:2x2x1
jax: 0.10.0
libtpu: 0.0.40
codegen_flags: <defaults>
</compile_context>

<pallas_src>
import math

import jax
import jax.numpy as jnp
from jax.experimental import pallas as pl
from jax.experimental.pallas import tpu as pltpu

# ------------------------- model hyper-parameters ---------------------------
BATCH = 8
STATE_DIM = 24
ACTION_DIM = 8
INPUT_DIM = STATE_DIM + ACTION_DIM      # 32  (cat([states, actions], 1))
HIDDEN = (32, 32)                       # base_hidden_dims
OUTPUT_DIM = 1                          # critic Q-value

# ------------------------ packed-parameter slab layout ----------------------
ROW_W1 = 0                              # rows [0, 32)   : W1  (in=32, out=32)
ROW_W2 = ROW_W1 + INPUT_DIM             # rows [32, 64)  : W2  (32, 32)
ROW_B1 = ROW_W2 + HIDDEN[0]             # row  64        : b1  (1, 32)
ROW_B2 = ROW_B1 + 1                     # row  65        : b2  (1, 32)
ROW_W34 = ROW_B2 + 1                    # row  66        : (W3 @ W4)^T  (1, 32)
ROW_B34 = ROW_W34 + 1                   # row  67, col 0 : b3 @ W4 + b4 (scalar)
SLAB_ROWS = ROW_B34 + 1                 # 68


def _swish(x):
    # nn.SiLU: x * sigmoid(x). exp -> EUP; approximate reciprocal -> EUP vrcp,
    # so the sigmoid stays off the VPU critical path entirely.
    return x * pl.reciprocal(1.0 + jnp.exp(-x), approx=True)


# ------------------------------- kernel -------------------------------------
def critic_kernel(s_ref, a_ref, p_ref, out_ref):
    s = s_ref[...]                                      # (B, STATE_DIM)
    a = a_ref[...]                                      # (B, ACTION_DIM)

    # Static slices of the single packed parameter slab (zero-cost views).
    w1s = p_ref[ROW_W1:ROW_W1 + STATE_DIM, :]           # (24, 32)
    w1a = p_ref[ROW_W1 + STATE_DIM:ROW_W2, :]           # (8, 32)
    w2 = p_ref[ROW_W2:ROW_W2 + HIDDEN[0], :]            # (32, 32)
    b1 = p_ref[ROW_B1:ROW_B1 + 1, :]                    # (1, 32)
    b2 = p_ref[ROW_B2:ROW_B2 + 1, :]                    # (1, 32)
    w34 = p_ref[ROW_W34:ROW_W34 + 1, :]                 # (1, 32) == (W3 @ W4)^T
    b34 = p_ref[ROW_B34:ROW_B34 + 1, 0:1]               # (1, 1)  == b3 @ W4 + b4

    # Layer 1: Linear(INPUT_DIM -> H1) + swish.
    # cat([s, a], 1) @ W1  ==  s @ W1[:STATE_DIM] + a @ W1[STATE_DIM:]
    h = (jnp.dot(s, w1s, preferred_element_type=jnp.float32)
         + jnp.dot(a, w1a, preferred_element_type=jnp.float32)
         + b1)
    h = _swish(h)

    # Layer 2: Linear(H1 -> H2) + swish.
    h = jnp.dot(h, w2, preferred_element_type=jnp.float32) + b2
    h = _swish(h)

    # Folded base_mlp-output + out_net:  (h @ W3 + b3) @ W4 + b4 == h @ W34 + b34.
    # N=1 layer done as VPU multiply + lane reduce (no MXU push for one column).
    out_ref[...] = jnp.sum(h * w34, axis=-1, keepdims=True) + b34


# ------------------------------- wrapper -------------------------------------
def pack_params(w1, b1, w2, b2, w3, b3, w4, b4):
    """Fold trailing linear layers and pack everything into one (68, 32) slab."""
    hp = lambda x, w: jnp.dot(x, w, precision=jax.lax.Precision.HIGHEST)
    w34 = hp(w3, w4)                                    # (32, 1), f32 exact fold
    b34 = hp(b3, w4) + b4                               # (1, 1)
    b34_row = jnp.zeros((1, HIDDEN[1]), jnp.float32).at[0, 0].set(b34[0, 0])
    slab = jnp.concatenate([w1, w2, b1, b2, w34.T, b34_row], axis=0)
    assert slab.shape == (SLAB_ROWS, HIDDEN[1])
    return slab.astype(jnp.float32)


def deterministic_critic(states, actions, param_slab):
    B = states.shape[0]
    return pl.pallas_call(
        critic_kernel,
        out_shape=jax.ShapeDtypeStruct((B, OUTPUT_DIM), jnp.float32),
        # No grid: single invocation, 3 input DMAs (states, actions, param slab).
        in_specs=[pl.BlockSpec(memory_space=pltpu.MemorySpace.VMEM)] * 3,
        out_specs=pl.BlockSpec(memory_space=pltpu.MemorySpace.VMEM),
    )(states, actions, param_slab)


# ---------------------------- pure-JAX reference -----------------------------
def critic_reference(states, actions, params):
    (w1, b1, w2, b2, w3, b3, w4, b4) = params
    hp = lambda x, w: jnp.dot(x, w, precision=jax.lax.Precision.HIGHEST)
    x = jnp.concatenate([states, actions], axis=1)
    h = hp(x, w1) + b1
    h = h * jax.nn.sigmoid(h)
    h = hp(h, w2) + b2
    h = h * jax.nn.sigmoid(h)
    h = hp(h, w3) + b3
    return hp(h, w4) + b4


# --------------------------------- main --------------------------------------
if __name__ == "__main__":
    key = jax.random.PRNGKey(0)
    ks = jax.random.split(key, 8)

    states = jax.random.normal(ks[0], (BATCH, STATE_DIM), dtype=jnp.float32)
    actions = jax.random.normal(ks[1], (BATCH, ACTION_DIM), dtype=jnp.float32)

    # nn.Linear-style init, weights stored pre-transposed as (in, out).
    def init_linear(k, fan_in, fan_out):
        bound = 1.0 / math.sqrt(fan_in)
        kw, kb = jax.random.split(k)
        w = jax.random.uniform(kw, (fan_in, fan_out), jnp.float32, -bound, bound)
        b = jax.random.uniform(kb, (1, fan_out), jnp.float32, -bound, bound)
        return w, b

    w1, b1 = init_linear(ks[2], INPUT_DIM, HIDDEN[0])    # Linear(32, 32) + swish
    w2, b2 = init_linear(ks[3], HIDDEN[0], HIDDEN[1])    # Linear(32, 32) + swish
    w3, b3 = init_linear(ks[4], HIDDEN[1], HIDDEN[1])    # MLP final Linear(32, 32)
    w4, b4 = init_linear(ks[5], HIDDEN[1], OUTPUT_DIM)   # out_net Linear(32, 1)

    raw_params = (w1, b1, w2, b2, w3, b3, w4, b4)
    param_slab = pack_params(*raw_params)                # fold + pack, done once

    out = deterministic_critic(states, actions, param_slab)
    jax.block_until_ready(out)

    ref = critic_reference(states, actions, raw_params)
    assert out.shape == (BATCH, OUTPUT_DIM)
    err = float(jnp.max(jnp.abs(out - ref)))
    assert jnp.allclose(out, ref, atol=2e-3, rtol=2e-3), err

    print("KERNEL_OK")
</pallas_src>

<mosaic_0001>
module attributes {stable_mosaic.version = 11 : i64} {
  func.func @critic_kernel(%arg0: memref<8x24xf32, #tpu.memory_space<vmem>>, %arg1: memref<8x8xf32, #tpu.memory_space<vmem>>, %arg2: memref<68x32xf32, #tpu.memory_space<vmem>>, %arg3: memref<8x1xf32, #tpu.memory_space<vmem>>) attributes {dimension_semantics = [], scalar_prefetch = 0 : i64, scratch_operands = 0 : i64, tpu.core_type = #tpu.core_type<tc>} {
    %c0 = arith.constant 0 : index
    %c0_0 = arith.constant 0 : index
    %0 = vector.load %arg0[%c0, %c0_0] : memref<8x24xf32, #tpu.memory_space<vmem>>, vector<8x24xf32>
    %c0_1 = arith.constant 0 : index
    %c0_2 = arith.constant 0 : index
    %1 = vector.load %arg1[%c0_1, %c0_2] : memref<8x8xf32, #tpu.memory_space<vmem>>, vector<8x8xf32>
    %c0_3 = arith.constant 0 : index
    %c0_4 = arith.constant 0 : index
    %2 = vector.load %arg2[%c0_3, %c0_4] : memref<68x32xf32, #tpu.memory_space<vmem>>, vector<24x32xf32>
    %c24 = arith.constant 24 : index
    %c0_5 = arith.constant 0 : index
    %3 = vector.load %arg2[%c24, %c0_5] : memref<68x32xf32, #tpu.memory_space<vmem>>, vector<8x32xf32>
    %c32 = arith.constant 32 : index
    %c0_6 = arith.constant 0 : index
    %4 = vector.load %arg2[%c32, %c0_6] : memref<68x32xf32, #tpu.memory_space<vmem>>, vector<32x32xf32>
    %c64 = arith.constant 64 : index
    %c0_7 = arith.constant 0 : index
    %5 = vector.load %arg2[%c64, %c0_7] : memref<68x32xf32, #tpu.memory_space<vmem>>, vector<1x32xf32>
    %c65 = arith.constant 65 : index
    %c0_8 = arith.constant 0 : index
    %6 = vector.load %arg2[%c65, %c0_8] : memref<68x32xf32, #tpu.memory_space<vmem>>, vector<1x32xf32>
    %c66 = arith.constant 66 : index
    %c0_9 = arith.constant 0 : index
    %7 = vector.load %arg2[%c66, %c0_9] : memref<68x32xf32, #tpu.memory_space<vmem>>, vector<1x32xf32>
    %c67 = arith.constant 67 : index
    %c0_10 = arith.constant 0 : index
    %8 = vector.load %arg2[%c67, %c0_10] : memref<68x32xf32, #tpu.memory_space<vmem>>, vector<1x1xf32>
    %cst = arith.constant dense<0.000000e+00> : vector<8x32xf32>
    %9 = tpu.matmul %0, %2, %cst {dimension_numbers = #tpu.dot_dimension_numbers<[1], [0], [0], [1], [0, 0, 1, 1], [], []>} : vector<8x24xf32>, vector<24x32xf32>, vector<8x32xf32> -> vector<8x32xf32>
    %cst_11 = arith.constant dense<0.000000e+00> : vector<8x32xf32>
    %10 = tpu.matmul %1, %3, %cst_11 {dimension_numbers = #tpu.dot_dimension_numbers<[1], [0], [0], [1], [0, 0, 1, 1], [], []>} : vector<8x8xf32>, vector<8x32xf32>, vector<8x32xf32> -> vector<8x32xf32>
    %11 = arith.addf %9, %10 : vector<8x32xf32>
    %12 = vector.broadcast %5 : vector<1x32xf32> to vector<8x32xf32>
    %13 = arith.addf %11, %12 : vector<8x32xf32>
    %cst_12 = arith.constant 0.000000e+00 : f32
    %14 = vector.broadcast %cst_12 : f32 to vector<8x32xf32>
    %15 = arith.subf %14, %13 : vector<8x32xf32>
    %16 = math.exp %15 : vector<8x32xf32>
    %cst_13 = arith.constant 1.000000e+00 : f32
    %17 = vector.broadcast %cst_13 : f32 to vector<8x32xf32>
    %18 = arith.addf %17, %16 : vector<8x32xf32>
    %19 = tpu.reciprocal %18 {approx = true} : vector<8x32xf32> -> vector<8x32xf32>
    %20 = arith.mulf %13, %19 : vector<8x32xf32>
    %cst_14 = arith.constant dense<0.000000e+00> : vector<8x32xf32>
    %21 = tpu.matmul %20, %4, %cst_14 {dimension_numbers = #tpu.dot_dimension_numbers<[1], [0], [0], [1], [0, 0, 1, 1], [], []>} : vector<8x32xf32>, vector<32x32xf32>, vector<8x32xf32> -> vector<8x32xf32>
    %22 = vector.broadcast %6 : vector<1x32xf32> to vector<8x32xf32>
    %23 = arith.addf %21, %22 : vector<8x32xf32>
    %cst_15 = arith.constant 0.000000e+00 : f32
    %24 = vector.broadcast %cst_15 : f32 to vector<8x32xf32>
    %25 = arith.subf %24, %23 : vector<8x32xf32>
    %26 = math.exp %25 : vector<8x32xf32>
    %cst_16 = arith.constant 1.000000e+00 : f32
    %27 = vector.broadcast %cst_16 : f32 to vector<8x32xf32>
    %28 = arith.addf %27, %26 : vector<8x32xf32>
    %29 = tpu.reciprocal %28 {approx = true} : vector<8x32xf32> -> vector<8x32xf32>
    %30 = arith.mulf %23, %29 : vector<8x32xf32>
    %31 = vector.broadcast %7 : vector<1x32xf32> to vector<8x32xf32>
    %32 = arith.mulf %30, %31 : vector<8x32xf32>
    %cst_17 = arith.constant dense<0.000000e+00> : vector<8xf32>
    %33 = vector.multi_reduction <add>, %32, %cst_17 [1] : vector<8x32xf32> to vector<8xf32>
    %34 = vector.shape_cast %33 : vector<8xf32> to vector<8x1xf32>
    %35 = vector.broadcast %8 : vector<1x1xf32> to vector<8x1xf32>
    %36 = arith.addf %34, %35 : vector<8x1xf32>
    %c0_18 = arith.constant 0 : index
    %c0_19 = arith.constant 0 : index
    %37 = vector.load %arg3[%c0_18, %c0_19] : memref<8x1xf32, #tpu.memory_space<vmem>>, vector<8x1xf32>
    tpu.vector_store %arg3[%c0_18, %c0_19], %36 {strides = array<i32>} : memref<8x1xf32, #tpu.memory_space<vmem>>, vector<8x1xf32>,
    return
  }
}

</mosaic_0001>

<bundles_post_ra>
// kernel: tpu_custom_call.1
= control target key start
LH: loop header
LB: loop body
LE: loop exit
PB: predicated region body
PF: predicated region fallthrough
CT: control target
= control target key end

     0   :  { %vm28_vm0 = vcmask 64512   ;;  %v343_v0 = vmov 0.0   ;;  %vm344_vm1 = vmmov 0   ;;  %vm102_vm2 = vcmask 195584   ;;  %s412_s2 = inlined_call_operand.vmem [shape: f32[68,32], index: 2, kind: input, shape index: {}]   ;;  %s413_s1 = inlined_call_operand.vmem [shape: f32[8,8], index: 1, kind: input, shape index: {}]   ;;  %s414_s0 = inlined_call_operand.vmem [shape: f32[8,24], index: 0, kind: input, shape index: {}]   ;;  %s415_s3 = inlined_call_operand.vmem [shape: f32[8,1], index: 3, kind: output, shape index: {}]  }
   0x1   :  { %308 = vmatprep.subr.mxu1 %v343_v0  ;;  %v19_v1 = vld [vmem:[%s412_s2 + $0x18] sm:$0xff]  ;;  %310 = vmatprep.mubr.msk.f32.mxu1 %vm344_vm1, %v343_v0  ;;  %v15_v2 = vld [vmem:[%s413_s1] sm:$0xff]  ;;  %v18_v3 = vld [vmem:[%s412_s2 + $0x10] sm:$0xff]  ;;  %vm191_vm3 = vcmask 261120   ;;  %vm284_vm4 = vcmask 7168  }
   0x2   :  { %309 = vmatpush3.msra.mxu1 %v19_v1  ;;  %322 = vmatprep.subr.mxu0 %v343_v0  ;;  %v17_v4 = vld [vmem:[%s412_s2 + $0x8] sm:$0xff]  ;;  %v16_v5 = vld [vmem:[%s412_s2] sm:$0xff]  ;;  %v23_v7 = vld [vmem:[%s412_s2 + $0x38] sm:$0xff] }
   0x3   :  { %311 = vmatmul.mubr.msk.f32.vlgmr.msra.gmra.mxu1 %vm28_vm0, %v15_v2  ;;  %313 = vmatprep.subr.mxu1 %v343_v0  ;;  %v14_v6 = vld [vmem:[%s414_s0] sm:$0xff]  ;;  %v22_v8 = vld [vmem:[%s412_s2 + $0x30] sm:$0xff]  ;;  %v21_v9 = vld [vmem:[%s412_s2 + $0x28] sm:$0xff] }
   0x4   :  { %314 = vmatpush3.msra.mxu1 %v18_v3  ;;  %319 = vmatprep.mubr.msk.f32.mxu1 %vm344_vm1, %v343_v0  ;;  %v20_v10 = vld [vmem:[%s412_s2 + $0x20] sm:$0xff] }
   0x5   :  { %315 = vmatprep.subr.mxu1 %v343_v0  ;;  %330 = vmatprep.mubr.msk.f32.mxu0 %vm344_vm1, %v343_v0  ;;  %v292_v13 = vld [vmem:[%s412_s2 + $0x40] ss:$0 sm:$0xff]  ;;  %v293_v24 = vld [vmem:[%s412_s2 + $0x41] ss:$0 sm:$0xff]  ;;  %v295_v33 = vld [vmem:[%s412_s2 + $0x42] ss:$0 sm:$0xff] }
   0x6   :  { %316 = vmatpush3.msra.mxu1 %v17_v4  ;;  %323 = vmatpush3.msra.mxu0 %v23_v7  ;;  %v296_v37 = vld [vmem:[%s412_s2 + $0x43] ss:$0 sm:$0xff] }
   0x7   :  { %317 = vmatprep.subr.mxu1 %v343_v0  ;;  %324 = vmatprep.subr.mxu0 %v343_v0 }
   0x8   :  { %318 = vmatpush3.msra.mxu1 %v16_v5  ;;  %325 = vmatpush3.msra.mxu0 %v22_v8 }
   0x9   :  { %320 = vmatmul.mubr.msk.f32.vlgmr.msra.gmra.mxu1 %vm102_vm2, %v14_v6  ;;  %326 = vmatprep.subr.mxu0 %v343_v0 }
   0xa   :  { %327 = vmatpush3.msra.mxu0 %v21_v9 }
   0xb   :  { %328 = vmatprep.subr.mxu0 %v343_v0 }
   0xc   :  { %329 = vmatpush3.msra.mxu0 %v20_v10 }
  0xc3   :  { %v98_v11 = vpop.f32.mrf.mxu1 }
  0xc5   :  { %v312_v12 = vpop.f32.mrf.mxu1 }
  0xc9   :  { %v172_v14 = vpop.f32.mrf.mxu1 }
  0xca   :  { %v173_v15 = vadd.f32 %v172_v14, %v98_v11 }
  0xcb   :  { %v321_v16 = vpop.f32.mrf.mxu1 }
  0xcc   :  { %v180_v17 = vadd.f32 %v292_v13, %v173_v15 }
  0xce   :  { %v181_v18 = vsub.f32 0.0, %v180_v17 }
  0xd0   :  { %v182_v19 = vmul.f32 1.442695, %v181_v18 }
  0xd2   :  { %335 = vpow2.f32 %v182_v19 }
  0xdf   :  { %v336_v20 = vpop.eup %335 }
  0xe0   :  { %v184_v21 = vadd.f32 1.0, %v336_v20 }
  0xe2   :  { %337 = vrcp.f32 %v184_v21 }
  0xef   :  { %v338_v22 = vpop.eup %337 }
  0xf0   :  { %v186_v23 = vmul.f32 %v338_v22, %v180_v17 }
  0xf2   :  { %331 = vmatmul.mubr.msk.f32.vlgmr.msra.gmra.mxu0 %vm191_vm3, %v186_v23 }
 0x1b2   :  { %v261_v25 = vpop.f32.mrf.mxu0 }
 0x1b3   :  { %v262_v26 = vadd.f32 %v293_v24, %v261_v25 }
 0x1b4   :  { %v332_v27 = vpop.f32.mrf.mxu0 }
 0x1b5   :  { %v265_v28 = vsub.f32 0.0, %v262_v26 }
 0x1b7   :  { %v266_v29 = vmul.f32 1.442695, %v265_v28 }
 0x1b9   :  { %339 = vpow2.f32 %v266_v29 }
 0x1c6   :  { %v340_v30 = vpop.eup %339 }
 0x1c7   :  { %v268_v31 = vadd.f32 1.0, %v340_v30 }
 0x1c9   :  { %341 = vrcp.f32 %v268_v31 }
 0x1d6   :  { %v342_v32 = vpop.eup %341 }
 0x1d7   :  { %v270_v34 = vmul.f32 %v342_v32, %v262_v26 }
 0x1d9   :  { %v275_v35 = vmul.f32 %v295_v33, %v270_v34 }
 0x1db   :  { %v276_v36 = vsel %vm191_vm3, %v275_v35, 0.0 }
 0x1dc   :  { %277 = vadd.xlane.f32.xlu0 %v276_v36 }
 0x265   :  { %v278_v38 = vpop.xlane.xlu0 %277 }
 0x266   :  { %v283_v39 = vadd.f32 %v296_v37, %v278_v38 }
 0x268   :  { %285 = vst.msk [vmem:[%s415_s3] sm:$0xff] %vm284_vm4, %v283_v39 }

</bundles_post_ra>
